<compile_context>
chip_gen: v5e
topology: v5e:2x2
jax: 0.10.0
libtpu: 0.0.40
codegen_flags: <defaults>
</compile_context>

<pallas_src>
import functools
import math

import jax
import jax.numpy as jnp
from jax import lax
from jax.experimental import pallas as pl
from jax.experimental.pallas import tpu as pltpu


def _round_up(x, m):
    return ((x + m - 1) // m) * m


def _pick_tile(dim, pref, align):
    """Largest tile <= pref that is a multiple of `align` and divides `dim`;
    falls back to the full dimension (always a legal BlockSpec block)."""
    if dim <= pref:
        return dim
    t = (pref // align) * align
    while t >= align:
        if dim % t == 0:
            return t
        t -= align
    return dim


@functools.lru_cache(maxsize=None)
def _vmem_limit_bytes():
    """~75% of physical VMEM (96 MiB v5e/v6e, 48 MiB v7x); safe fallback if query fails."""
    cap = None
    try:
        cap = int(pltpu.get_tpu_info().vmem_capacity_bytes)
    except Exception:
        cap = None
    if not cap or cap <= 0:
        cap = 64 * 1024 * 1024
    return (cap * 3) // 4


# ---------------------------------------------------------------------------
# Tiled, pipelined linear:  y = x @ Wt + b     (Wt pre-transposed: (Din, Dout))
# ---------------------------------------------------------------------------
def _linear_kernel(x_ref, wt_ref, b_ref, o_ref, acc_ref, *, cast_to_bf16):
    @pl.when(pl.program_id(2) == 0)
    def _init():
        acc_ref[...] = jnp.zeros_like(acc_ref)

    x = x_ref[...]
    if cast_to_bf16 and x.dtype != jnp.bfloat16:
        x = x.astype(jnp.bfloat16)           # weights are already bf16-resident (no per-step cast)
    acc_ref[...] += jnp.dot(x, wt_ref[...], preferred_element_type=jnp.float32)

    @pl.when(pl.program_id(2) == pl.num_programs(2) - 1)
    def _finalize():
        o_ref[...] = (acc_ref[...] + b_ref[...].astype(jnp.float32)).astype(o_ref.dtype)


def pallas_linear(x, wt, b2, *, use_bf16=True):
    """x: (M, Din), wt: (Din, Dout) pre-transposed, b2: (1, Dout) f32 -> (M, Dout) in x.dtype."""
    M, Din = x.shape
    Dout = wt.shape[1]
    # Pad M to the row tile instead of falling back to a full-M slab.
    tm = min(512, _round_up(M, 8))
    Mp = _round_up(M, tm)
    if Mp != M:
        x = jnp.pad(x, ((0, Mp - M), (0, 0)))
    tn = _pick_tile(Dout, 512, 128)
    tk = _pick_tile(Din, 1024, 128)
    grid = (Mp // tm, Dout // tn, Din // tk)
    kernel = functools.partial(_linear_kernel, cast_to_bf16=use_bf16)
    out = pl.pallas_call(
        kernel,
        out_shape=jax.ShapeDtypeStruct((Mp, Dout), x.dtype),
        grid_spec=pltpu.PrefetchScalarGridSpec(
            num_scalar_prefetch=0,
            grid=grid,
            in_specs=[
                pl.BlockSpec((tm, tk), lambda i, j, k: (i, k)),
                pl.BlockSpec((tk, tn), lambda i, j, k: (k, j)),
                pl.BlockSpec((1, tn), lambda i, j, k: (0, j)),
            ],
            out_specs=pl.BlockSpec((tm, tn), lambda i, j, k: (i, j)),
            scratch_shapes=[pltpu.VMEM((tm, tn), jnp.float32)],
        ),
        compiler_params=pltpu.CompilerParams(
            dimension_semantics=("parallel", "parallel", "arbitrary"),
            vmem_limit_bytes=_vmem_limit_bytes(),
        ),
    )(x, wt, b2)
    return out[:M] if Mp != M else out


# ---------------------------------------------------------------------------
# Top-k attention kernel: one (batch, query-tile) per grid step, heads streamed
# one at a time inside the kernel (only one head's (tq, Lk) working set is live).
# Input/output blocks are lane-dense (last dim = d_model); no HBM transposes.
# ---------------------------------------------------------------------------
def _topk_attn_kernel(q_ref, k_ref, v_ref, o_ref, *, num_heads, topk, use_bf16):
    f32 = jnp.float32
    tq, d_model = q_ref.shape
    H = num_heads
    dk = d_model // H
    dot_dtype = jnp.bfloat16 if use_bf16 else f32
    neg = jnp.finfo(f32).min
    scale = 1.0 / math.sqrt(dk)   # folded into q (tq*dk muls per head, not tq*lk divides)

    def _remove_row_max(_, cur):
        row_max = jnp.max(cur, axis=-1, keepdims=True)
        return jnp.where(cur == row_max, neg, cur)

    for h in range(H):            # static unroll over heads; big temporaries die per head
        lo, hi = h * dk, (h + 1) * dk
        q_h = (q_ref[:, lo:hi] * scale).astype(dot_dtype)          # (tq, dk)
        k_h = k_ref[:, lo:hi].astype(dot_dtype)                    # (lk, dk), stored dtype
        scores = lax.dot_general(q_h, k_h, (((1,), (1,)), ((), ())),
                                 preferred_element_type=f32)       # (tq, lk)

        # k-th largest score per row via (topk-1) iterative max removals (fori_loop keeps
        # the live set to a single (tq, lk) f32 carry). Ties at a removed max are all kept.
        m = jnp.max(scores, axis=-1, keepdims=True)                # top-1; softmax shift
        if topk > 1:
            cur = jnp.where(scores == m, neg, scores)
            if topk > 2:
                cur = lax.fori_loop(1, topk - 1, _remove_row_max, cur)
            thresh = jnp.max(cur, axis=-1, keepdims=True)
        else:
            thresh = m

        # Softmax over the selected scores only (== softmax of the gathered top-k scores).
        e = jnp.where(scores >= thresh, jnp.exp(scores - m), 0.0)
        p = e * pl.reciprocal(jnp.sum(e, axis=-1, keepdims=True), approx=True)

        v_h = v_ref[:, lo:hi].astype(dot_dtype)                    # (lk, dk), stored dtype
        out_h = jnp.dot(p.astype(dot_dtype), v_h, preferred_element_type=f32)
        o_ref[:, lo:hi] = out_h.astype(o_ref.dtype)                # write head lanes in place


def topk_attention(q, k, v, num_heads, topk, *, use_bf16=True):
    """q: (B, Lq, D), k/v: (B, Lk, D) with D = num_heads*d_k -> (B, Lq, D)."""
    B, Lq, D = q.shape
    Lk = k.shape[1]
    assert topk <= Lk, f"topk ({topk}) must be <= key length ({Lk})"
    tq_align = 16 if use_bf16 else 8
    tq = min(256, _round_up(Lq, tq_align))
    Lqp = _round_up(Lq, tq)
    if Lqp != Lq:
        q = jnp.pad(q, ((0, 0), (0, Lqp - Lq), (0, 0)))
    grid = (B, Lqp // tq)
    kernel = functools.partial(_topk_attn_kernel, num_heads=num_heads, topk=topk,
                               use_bf16=use_bf16)
    out = pl.pallas_call(
        kernel,
        out_shape=jax.ShapeDtypeStruct((B, Lqp, D), q.dtype),
        grid_spec=pltpu.PrefetchScalarGridSpec(
            num_scalar_prefetch=0,
            grid=grid,
            in_specs=[
                pl.BlockSpec((None, tq, D), lambda b, qi: (b, qi, 0)),
                pl.BlockSpec((None, Lk, D), lambda b, qi: (b, 0, 0)),
                pl.BlockSpec((None, Lk, D), lambda b, qi: (b, 0, 0)),
            ],
            out_specs=pl.BlockSpec((None, tq, D), lambda b, qi: (b, qi, 0)),
        ),
        compiler_params=pltpu.CompilerParams(
            dimension_semantics=("parallel", "parallel"),
            vmem_limit_bytes=_vmem_limit_bytes(),
        ),
    )(q, k, v)
    return out[:, :Lq] if Lqp != Lq else out


# ---------------------------------------------------------------------------
# MultiThreadMemory wrapper (parameters built deterministically in-script)
# ---------------------------------------------------------------------------
class MultiThreadMemoryPallas:
    """Eval-mode MultiThreadMemory.  Weights stored pre-transposed (Din, Dout), pre-cast to
    bf16 when use_bf16 (biases stay f32).  QKV projections fuse to one matmul when
    query is key is value."""

    def __init__(self, h, d_model, topk=32, seed=0, use_bf16=True):
        assert d_model % h == 0
        self.h = h
        self.d_k = d_model // h
        self.topk = topk
        self.use_bf16 = use_bf16
        wdtype = jnp.bfloat16 if use_bf16 else jnp.float32
        key = jax.random.PRNGKey(seed)
        keys = jax.random.split(key, 8)
        bound = 1.0 / math.sqrt(d_model)   # nn.Linear default init range
        self.wts, self.b2s = [], []
        for i in range(4):
            w = jax.random.uniform(keys[2 * i], (d_model, d_model),
                                   jnp.float32, -bound, bound)
            b = jax.random.uniform(keys[2 * i + 1], (d_model,),
                                   jnp.float32, -bound, bound)
            self.wts.append(jnp.transpose(w).astype(wdtype))     # transposed + cast once
            self.b2s.append(b.reshape(1, d_model))               # bias kept f32
        # Fused QKV weights for the self-attention fast path.
        self.wqkv_t = jnp.concatenate(self.wts[:3], axis=1)      # (D, 3D)
        self.bqkv = jnp.concatenate(self.b2s[:3], axis=1)        # (1, 3D)

    def __call__(self, query, key, value):
        B, Lq, D = query.shape
        Lk = key.shape[1]
        ub = self.use_bf16
        if query is key and key is value:
            # Self-attention: single (D, 3D) projection (1/3 the input HBM reads).
            qkv = pallas_linear(query.reshape(B * Lq, D), self.wqkv_t, self.bqkv, use_bf16=ub)
            q = qkv[:, :D]
            k = qkv[:, D:2 * D].reshape(B, Lq, D)
            v = qkv[:, 2 * D:].reshape(B, Lq, D)
        else:
            q = pallas_linear(query.reshape(B * Lq, D), self.wts[0], self.b2s[0], use_bf16=ub)
            k = pallas_linear(key.reshape(B * Lk, D), self.wts[1], self.b2s[1],
                              use_bf16=ub).reshape(B, Lk, D)
            v = pallas_linear(value.reshape(B * Lk, D), self.wts[2], self.b2s[2],
                              use_bf16=ub).reshape(B, Lk, D)

        # Heads are split/merged inside the attention kernel -> no HBM transposes here.
        x = topk_attention(q.reshape(B, Lq, D), k, v, self.h, self.topk, use_bf16=ub)

        out = pallas_linear(x.reshape(B * Lq, D), self.wts[3], self.b2s[3], use_bf16=ub)
        return out.reshape(B, Lq, D)


# ---------------------------------------------------------------------------
# Pure-JAX reference (mirrors the PyTorch forward; eval, no mask/layer_past)
# ---------------------------------------------------------------------------
def _reference(module, query, key, value):
    B, Lq, D = query.shape
    Lk = key.shape[1]
    H, dk, topk = module.h, module.d_k, module.topk
    w = [wt.astype(jnp.float32) for wt in module.wts]
    q = query.reshape(B * Lq, D) @ w[0] + module.b2s[0]
    k = key.reshape(B * Lk, D) @ w[1] + module.b2s[1]
    v = value.reshape(B * Lk, D) @ w[2] + module.b2s[2]
    q = q.reshape(B, Lq, H, dk).transpose(0, 2, 1, 3)
    k = k.reshape(B, Lk, H, dk).transpose(0, 2, 1, 3)
    v = v.reshape(B, Lk, H, dk).transpose(0, 2, 1, 3)
    scores = jnp.einsum('bhqd,bhkd->bhqk', q, k) / math.sqrt(dk)
    top_s, top_i = jax.lax.top_k(scores, topk)
    p = jax.nn.softmax(top_s, axis=-1)
    dummy_v = jnp.broadcast_to(v[:, :, None, :, :], (B, H, Lq, Lk, dk))
    dummy_i = jnp.broadcast_to(top_i[..., None], (B, H, Lq, topk, dk))
    sel_v = jnp.take_along_axis(dummy_v, dummy_i, axis=3)
    x = jnp.einsum('bhqt,bhqtd->bhqd', p, sel_v)
    x = x.transpose(0, 2, 1, 3).reshape(B * Lq, D)
    return (x @ w[3] + module.b2s[3]).reshape(B, Lq, D)


if __name__ == "__main__":
    B, Lq, Lk = 2, 8, 16
    h, d_model, topk = 4, 32, 4

    rng = jax.random.PRNGKey(0)
    kq, kk, kv = jax.random.split(rng, 3)
    query = jax.random.normal(kq, (B, Lq, d_model), jnp.float32)
    key = jax.random.normal(kk, (B, Lk, d_model), jnp.float32)
    value = jax.random.normal(kv, (B, Lk, d_model), jnp.float32)

    # f32 module: exact-path correctness vs the JAX reference.
    module = MultiThreadMemoryPallas(h=h, d_model=d_model, topk=topk, seed=0, use_bf16=False)
    out = module(query, key, value)
    jax.block_until_ready(out)
    assert out.shape == (B, Lq, d_model)
    ref = _reference(module, query, key, value)
    assert jnp.allclose(out, ref, atol=5e-3, rtol=5e-3), "mismatch vs JAX reference (cross)"

    # Self-attention path exercises the fused QKV projection.
    out_sa = module(query, query, query)
    jax.block_until_ready(out_sa)
    ref_sa = _reference(module, query, query, query)
    assert jnp.allclose(out_sa, ref_sa, atol=5e-3, rtol=5e-3), "mismatch vs JAX reference (self)"

    # bf16-weights module: smoke test only (near-tied top-k indices may legitimately differ).
    module_bf16 = MultiThreadMemoryPallas(h=h, d_model=d_model, topk=topk, seed=0, use_bf16=True)
    out_bf = module_bf16(query, key, value)
    jax.block_until_ready(out_bf)
    assert out_bf.shape == (B, Lq, d_model)
    assert bool(jnp.isfinite(out_bf).all())

    print("KERNEL_OK")
</pallas_src>

<mosaic_0001>
module attributes {stable_mosaic.version = 11 : i64} {
  func.func @_linear_kernel(%arg0: i32, %arg1: i32, %arg2: i32, %arg3: memref<16x32xf32, #tpu.memory_space<vmem>>, %arg4: memref<32x32xf32, #tpu.memory_space<vmem>>, %arg5: memref<1x32xf32, #tpu.memory_space<vmem>>, %arg6: memref<16x32xf32, #tpu.memory_space<vmem>>, %arg7: memref<16x32xf32, #tpu.memory_space<vmem>>) attributes {dimension_semantics = [#tpu.dimension_semantics<parallel>, #tpu.dimension_semantics<parallel>, #tpu.dimension_semantics<arbitrary>], iteration_bounds = array<i64: 1, 1, 1>, scalar_prefetch = 0 : i64, scratch_operands = 1 : i64, tpu.core_type = #tpu.core_type<tc>, window_params = [{transform_indices = @transform_0, window_bounds = array<i64: 16, 32>}, {transform_indices = @transform_1, window_bounds = array<i64: 32, 32>}, {transform_indices = @transform_2, window_bounds = array<i64: 1, 32>}, {transform_indices = @transform_3, window_bounds = array<i64: 16, 32>}]} {
    %c0_i32 = arith.constant 0 : i32
    %0 = arith.cmpi eq, %arg2, %c0_i32 : i32
    %1 = arith.extui %0 : i1 to i32
    %c0_i32_0 = arith.constant 0 : i32
    %2 = arith.cmpi ne, %1, %c0_i32_0 : i32
    scf.if %2 {
      %cst_10 = arith.constant 0.000000e+00 : f32
      %12 = vector.broadcast %cst_10 : f32 to vector<16x32xf32>
      %c0_11 = arith.constant 0 : index
      %c0_12 = arith.constant 0 : index
      %13 = vector.load %arg7[%c0_11, %c0_12] : memref<16x32xf32, #tpu.memory_space<vmem>>, vector<16x32xf32>
      tpu.vector_store %arg7[%c0_11, %c0_12], %12 {strides = array<i32>} : memref<16x32xf32, #tpu.memory_space<vmem>>, vector<16x32xf32>,
    } else {
    }
    %c0 = arith.constant 0 : index
    %c0_1 = arith.constant 0 : index
    %3 = vector.load %arg3[%c0, %c0_1] : memref<16x32xf32, #tpu.memory_space<vmem>>, vector<16x32xf32>
    %c0_2 = arith.constant 0 : index
    %c0_3 = arith.constant 0 : index
    %4 = vector.load %arg7[%c0_2, %c0_3] : memref<16x32xf32, #tpu.memory_space<vmem>>, vector<16x32xf32>
    %c0_4 = arith.constant 0 : index
    %c0_5 = arith.constant 0 : index
    %5 = vector.load %arg4[%c0_4, %c0_5] : memref<32x32xf32, #tpu.memory_space<vmem>>, vector<32x32xf32>
    %cst = arith.constant dense<0.000000e+00> : vector<16x32xf32>
    %6 = tpu.matmul %3, %5, %cst {dimension_numbers = #tpu.dot_dimension_numbers<[1], [0], [0], [1], [0, 0, 1, 1], [], []>} : vector<16x32xf32>, vector<32x32xf32>, vector<16x32xf32> -> vector<16x32xf32>
    %7 = arith.addf %4, %6 : vector<16x32xf32>
    %c0_6 = arith.constant 0 : index
    %c0_7 = arith.constant 0 : index
    %8 = vector.load %arg7[%c0_6, %c0_7] : memref<16x32xf32, #tpu.memory_space<vmem>>, vector<16x32xf32>
    tpu.vector_store %arg7[%c0_6, %c0_7], %7 {strides = array<i32>} : memref<16x32xf32, #tpu.memory_space<vmem>>, vector<16x32xf32>,
    %c0_i32_8 = arith.constant 0 : i32
    %9 = arith.cmpi eq, %arg2, %c0_i32_8 : i32
    %10 = arith.extui %9 : i1 to i32
    %c0_i32_9 = arith.constant 0 : i32
    %11 = arith.cmpi ne, %10, %c0_i32_9 : i32
    scf.if %11 {
      %c0_10 = arith.constant 0 : index
      %c0_11 = arith.constant 0 : index
      %12 = vector.load %arg7[%c0_10, %c0_11] : memref<16x32xf32, #tpu.memory_space<vmem>>, vector<16x32xf32>
      %c0_12 = arith.constant 0 : index
      %c0_13 = arith.constant 0 : index
      %13 = vector.load %arg5[%c0_12, %c0_13] : memref<1x32xf32, #tpu.memory_space<vmem>>, vector<1x32xf32>
      %14 = vector.broadcast %13 : vector<1x32xf32> to vector<16x32xf32>
      %15 = arith.addf %12, %14 : vector<16x32xf32>
      %c0_14 = arith.constant 0 : index
      %c0_15 = arith.constant 0 : index
      %16 = vector.load %arg6[%c0_14, %c0_15] : memref<16x32xf32, #tpu.memory_space<vmem>>, vector<16x32xf32>
      tpu.vector_store %arg6[%c0_14, %c0_15], %15 {strides = array<i32>} : memref<16x32xf32, #tpu.memory_space<vmem>>, vector<16x32xf32>,
    } else {
    }
    return
  }
  func.func @transform_0(%arg0: i32, %arg1: i32, %arg2: i32) -> (i32, i32) {
    %c0_i32 = arith.constant 0 : i32
    return %arg0, %arg2 : i32, i32
  }
  func.func @transform_1(%arg0: i32, %arg1: i32, %arg2: i32) -> (i32, i32) {
    %c0_i32 = arith.constant 0 : i32
    return %arg2, %arg1 : i32, i32
  }
  func.func @transform_2(%arg0: i32, %arg1: i32, %arg2: i32) -> (i32, i32) {
    %c0_i32 = arith.constant 0 : i32
    %c0_i32_0 = arith.constant 0 : i32
    return %c0_i32, %arg1 : i32, i32
  }
  func.func @transform_3(%arg0: i32, %arg1: i32, %arg2: i32) -> (i32, i32) {
    %c0_i32 = arith.constant 0 : i32
    return %arg0, %arg1 : i32, i32
  }
}

</mosaic_0001>

<bundles_post_ra>
// kernel: tpu_custom_call.1
= control target key start
LH: loop header
LB: loop body
LE: loop exit
PB: predicated region body
PF: predicated region fallthrough
CT: control target
= control target key end

     0   :  { %8 = vsyncpa [#allocation4], 0  ;;  %s275_s0 = inlined_call_operand.hbm [shape: f32[16,32], index: 0, kind: input, shape index: {}]   ;;  %s276_s1 = inlined_call_operand.hbm [shape: f32[32,32], index: 1, kind: input, shape index: {}]   ;;  %s277_s2 = inlined_call_operand.vmem [shape: f32[1,32], index: 2, kind: input, shape index: {}]   ;;  %s278_s3 = inlined_call_operand.hbm [shape: f32[16,32], index: 3, kind: output, shape index: {}]  }
   0x1   :  { %9 = vsyncpa [#allocation7], 0 }
   0x2   :  { %10 = vsyncpa [#allocation5], 0  ;;  %s15_s14 = sshll.u32 %s275_s0, 4  ;;  %s220_s15 = smov [#allocation3]   ;;  %s16_s14 = int_to_ptr.hbm [resolvable:$true] %s15_s14 }
   0x3   :  { %s17_s16 = sshll.u32 %s220_s15, 4  ;;  %s28_s19 = sshll.u32 %s276_s1, 4  ;;  %s18_s16 = int_to_ptr.vmem [resolvable:$true] %s17_s16  ;;  %s29_s19 = int_to_ptr.hbm [resolvable:$true] %s28_s19 }
   0x4   :  { %s221_s20 = smov 128   ;;  %s222_s21 = smov 8  }
   0x5   :  { %23 = dma.hbm_to_vmem [thread:$0]  %s16_s14, 256, %s18_s16, [#allocation4], %s221_s20, %s221_s20, %s222_s21  }
   0x6   :  { %s223_s22 = smov [#allocation6]  }
   0x7   :  { %s30_s23 = sshll.u32 %s223_s22, 4  ;;  %s31_s23 = int_to_ptr.vmem [resolvable:$true] %s30_s23 }
   0x8   :  { %36 = dma.hbm_to_vmem [thread:$0]  %s29_s19, 512, %s31_s23, [#allocation7], %s221_s20, %s221_s20, %s222_s21  }
   0x9   :  { %214 = dma.done.wait [#allocation4], 256  }
   0xa   :  { %215 = vsyncadd [#allocation4], 4294967040 }
   0xb   :  { %216 = dma.done.wait [#allocation7], 512  }
   0xc   :  { %217 = vsyncadd [#allocation7], 4294966784  ;;  %vm51_vm0 = vcmask 261120   ;;  %v224_v0 = vmov 0.0   ;;  %v61_v1 = vld [vmem:[#allocation6 + $0x18] sm:$0xff]  ;;  %v60_v2 = vld [vmem:[#allocation6 + $0x10] sm:$0xff] }
   0xd   :  { %52 = vst.msk [vmem:[#allocation2] sm:$0xff] %vm51_vm0, %v224_v0  ;;  %81 = vmatpush.msra.mxu0 %v61_v1  ;;  %131 = vmatpush.msra.mxu1 %v61_v1  ;;  %v59_v3 = vld [vmem:[#allocation6 + $0x8] sm:$0xff]  ;;  %v58_v4 = vld [vmem:[#allocation6] sm:$0xff]  ;;  %v54_v5 = vld [vmem:[#allocation3] sm:$0xff]  ;;  %s225_s24 = smov [#allocation8]   ;;  %s115_s28 = sshll.u32 %s278_s3, 4  ;;  %s116_s28 = int_to_ptr.hbm [resolvable:$true] %s115_s28 }
   0xe   :  { %53 = vst.msk [vmem:[#allocation2 + $0x8] sm:$0xff] %vm51_vm0, %v224_v0  ;;  %v55_v6 = vld [vmem:[#allocation3 + $0x8] sm:$0xff]  ;;  %v141_v13 = vld [vmem:[%s277_s2] ss:$0 sm:$0xff]  ;;  %s113_s25 = sshll.u32 %s225_s24, 4  ;;  %s114_s25 = int_to_ptr.vmem [resolvable:$true] %s113_s25 }
   0xf   :  { %82 = vmatpush.msra.mxu0 %v60_v2  ;;  %132 = vmatpush.msra.mxu1 %v60_v2 }
  0x11   :  { %83 = vmatpush.msra.mxu0 %v59_v3  ;;  %133 = vmatpush.msra.mxu1 %v59_v3 }
  0x13   :  { %84 = vmatpush.msra.mxu0 %v58_v4  ;;  %134 = vmatpush.msra.mxu1 %v58_v4 }
  0x14   :  { %129 = vmatmul.msk.f32.vlgmr.msra.gmra.mxu0 %vm51_vm0, %v54_v5  ;;  %130 = vmatmul.msk.f32.vlgmr.msra.gmra.mxu1 %vm51_vm0, %v55_v6  ;;  %v56_v7 = vld [vmem:[#allocation2] sm:$0xff] }
  0x15   :  { %v57_v8 = vld [vmem:[#allocation2 + $0x8] sm:$0xff] }
  0x91   :  { %v86_v9 = vpop.f32.mrf.mxu0  ;;  %v89_v10 = vpop.f32.mrf.mxu1 }
  0x92   :  { %v92_v11 = vadd.f32 %v86_v9, %v56_v7  ;;  %v93_v12 = vadd.f32 %v89_v10, %v57_v8 }
  0x94   :  { %94 = vst.msk [vmem:[#allocation2] sm:$0xff] %vm51_vm0, %v92_v11 }
  0x95   :  { %95 = vst.msk [vmem:[#allocation2 + $0x8] sm:$0xff] %vm51_vm0, %v93_v12 }
  0x9b   :  { %v99_v14 = vld [vmem:[#allocation2] sm:$0xff] }
  0x9c   :  { %v100_v15 = vld [vmem:[#allocation2 + $0x8] sm:$0xff]  ;;  %v105_v16 = vadd.f32 %v141_v13, %v99_v14 }
  0x9d   :  { %v106_v17 = vadd.f32 %v141_v13, %v100_v15 }
  0x9e   :  { %107 = vst.msk [vmem:[#allocation8] sm:$0xff] %vm51_vm0, %v105_v16 }
  0x9f   :  { %108 = vst.msk [vmem:[#allocation8 + $0x8] sm:$0xff] %vm51_vm0, %v106_v17 }
  0xa0   :  { %121 = dma.vmem_to_hbm [thread:$0]  %s114_s25, 256, %s116_s28, [#allocation5], %s221_s20, %s221_s20, %s222_s21  }
  0xa1   :  { %218 = dma.done.wait [#allocation5], 256  }
  0xa2   :  { %219 = vsyncadd [#allocation5], 4294967040 }
  0xa3   :  { %126 = vsyncpa [#allocation4], 1 }
  0xa4   :  { %127 = vsyncpa [#allocation7], 1 }
  0xa5   :  { %128 = vsyncpa [#allocation5], 1 }

</bundles_post_ra>
